<compile_context>
chip_gen: v5e
topology: v5e:2x2
jax: 0.10.0
libtpu: 0.0.40
codegen_flags: <defaults>
</compile_context>

<pallas_src>
import functools

import jax
import jax.numpy as jnp
from jax.experimental import pallas as pl
from jax.experimental.pallas import tpu as pltpu


def _round_up(x, m):
    return ((x + m - 1) // m) * m


# ----------------------------------------------------------------------------
# Pallas kernel (one batch tile):
#   1) s = q_bf16 @ KnT_bf16 on the MXU (keys arrive normalized + transposed)
#   2) cos = s * rsqrt(max(||q||^2, 1e-24))   (query normalization folded in)
#   3) top-1 index per row, first occurrence on ties (torch.topk behaviour)
# ----------------------------------------------------------------------------
def _e_prompt_kernel(q_ref, knT_ref, cos_ref, idx_ref, *, pool):
    q = q_ref[...]                                        # (tb, kd) f32
    # F.normalize(x, dim=1): x / max(||x||, 1e-12) == x * rsqrt(max(ssq, 1e-24))
    ssq = jnp.sum(q * q, axis=1, keepdims=True)           # (tb, 1) f32

    # cos[b, k] = <q[b], Kn[k]> * rsqrt(ssq[b]); bf16 MXU feed, f32 accumulate.
    # RHS is already (kd, pool_pad): contraction-major, no per-step transpose.
    s = jnp.dot(q.astype(jnp.bfloat16), knT_ref[...],
                preferred_element_type=jnp.float32)        # (tb, pool_pad) f32
    cos = s * jax.lax.rsqrt(jnp.maximum(ssq, 1e-24))
    cos_ref[...] = cos

    # top_k=1, first index on ties. Padded key columns (>= pool) hold zeros in
    # cos; mask them out of the argmax (the stored cos is sliced later).
    pool_pad = cos.shape[1]
    lane = jax.lax.broadcasted_iota(jnp.int32, cos.shape, 1)
    masked = jnp.where(lane < pool, cos, -jnp.inf)
    mx = jnp.max(masked, axis=1, keepdims=True)
    idx_ref[...] = jnp.min(jnp.where(masked == mx, lane, pool_pad),
                           axis=1, keepdims=True)          # (tb, 1) int32


# ----------------------------------------------------------------------------
# Wrapper helpers
# ----------------------------------------------------------------------------
def _pick_tb(batch, kd, pool_pad, *, budget_bytes=24 << 20, tb_max=1024):
    """Batch-tile size.

    With the prompt gather removed from the kernel, the per-tile working set
    is tiny (q + cos + idx, double-buffered, plus the small resident key
    pool), so the VMEM budget almost never binds; the caps that matter are
    tb_max and keeping the grid >= 2 steps when the batch allows so
    dimension_semantics=("parallel",) can shard across v7x's two TensorCores.
    24 MiB budget / 32 MiB scoped limit is legal on v5e, v6e and v7x (64 MiB
    physical per TC) with ample headroom.
    """
    resident = 2 * kd * pool_pad * 2                 # KnT bf16 (double-buffered)
    per_row = 2 * (4 * kd + 4 * pool_pad + 4)        # q + cos + idx, double-buf
    if budget_bytes > resident + 8 * per_row:
        tb = (budget_bytes - resident) // per_row
    else:
        tb = 8
    b_pad8 = _round_up(batch, 8)
    tb = min(int(tb), tb_max, b_pad8)
    if b_pad8 >= 16:
        # keep >= 2 grid steps -> both v7x TensorCores get work
        tb = min(tb, _round_up(b_pad8 // 2, 8))
    return max(8, (tb // 8) * 8)


def _prep_keys(e_k):
    """Normalize keys once, cast bf16, pad pool -> 128, transpose to (kd, pad)."""
    pool, kd = e_k.shape
    pool_pad = _round_up(max(pool, 1), 128)
    k32 = e_k.astype(jnp.float32)
    kn = k32 * jax.lax.rsqrt(
        jnp.maximum(jnp.sum(k32 * k32, axis=1, keepdims=True), 1e-24))
    knT = jnp.zeros((kd, pool_pad), jnp.bfloat16).at[:, :pool].set(
        kn.T.astype(jnp.bfloat16))
    return knT


def _e_prompt_topk_padded(x_querry, knT_pad, pool, *, tb=None):
    """Run the Pallas kernel against a pre-normalized / transposed key pool.

    Returns (cos_sim (B, pool) f32, argmax index (B,) int32)."""
    B, kd = x_querry.shape
    _, pool_pad = knT_pad.shape

    if tb is None:
        tb = _pick_tb(B, kd, pool_pad)
    tb = max(8, (int(tb) // 8) * 8)
    B_pad = _round_up(B, tb)

    q = x_querry.astype(jnp.float32)
    if B_pad != B:
        # Padded rows are all-zero queries: ssq == 0 -> cos == 0 -> idx == 0.
        # They are sliced off below; never consume rows >= B downstream.
        q = jnp.zeros((B_pad, kd), jnp.float32).at[:B].set(q)

    cos, idx = pl.pallas_call(
        functools.partial(_e_prompt_kernel, pool=pool),
        out_shape=(jax.ShapeDtypeStruct((B_pad, pool_pad), jnp.float32),
                   jax.ShapeDtypeStruct((B_pad, 1), jnp.int32)),
        grid=(B_pad // tb,),
        in_specs=[
            pl.BlockSpec((tb, kd), lambda i: (i, 0)),        # query: tiled over B
            # Resident constant key pool (index_map is (0, 0) every step).
            # TODO(synk): pipeline_mode=pl.Buffered(1) would drop its second
            # buffer, but after removing the prompt pool it is only
            # ~kd*128*2 bytes, so the saving is noise.
            pl.BlockSpec((kd, pool_pad), lambda i: (0, 0)),
        ],
        out_specs=(
            pl.BlockSpec((tb, pool_pad), lambda i: (i, 0)),  # lane-dense (128)
            pl.BlockSpec((tb, 1), lambda i: (i, 0)),
        ),
        compiler_params=pltpu.CompilerParams(
            dimension_semantics=("parallel",),
            vmem_limit_bytes=32 * 1024 * 1024),
    )(q, knT_pad)

    return cos[:B, :pool], idx[:B, 0]


def e_prompt_topk(x_querry, e_k, *, tb=None):
    """Returns (cos_sim (B, pool) f32, top-1 key index (B,) int32)."""
    knT_pad = _prep_keys(e_k)
    return _e_prompt_topk_padded(x_querry, knT_pad, e_k.shape[0], tb=tb)


def e_prompt_select(x_querry, e_k, e_p, *, tb=None):
    """Returns (cos_sim (B,pool) f32, selected prompt p[argmax] (B, Lp, emb_d)).

    The row gather runs in plain JAX (exact f32), not in the kernel."""
    cos, idx = e_prompt_topk(x_querry, e_k, tb=tb)
    sel = jnp.take(e_p.astype(jnp.float32), idx, axis=0)
    return cos, sel


# ----------------------------------------------------------------------------
# DualPrompt module (parameters initialized deterministically in-script).
# ----------------------------------------------------------------------------
class DualPromptPallas:
    def __init__(self, emb_d, n_tasks, e_prompt_pool, e_prompt_length,
                 g_prompt_length, prompt_mode='prompt-tune', key_dim=768,
                 rng=None):
        assert prompt_mode == 'prompt-tune', \
            "prompt_mode should be 'prompt-tune' in Dual-Prompt!"
        self.task_count = 0
        self.emb_d = emb_d
        self.key_d = key_dim
        self.n_tasks = n_tasks
        self.top_k = 1
        self.task_id_bootstrap = True
        self.g_layers = [0, 1]
        self.e_layers = [2, 3, 4]
        self.g_p_length = g_prompt_length
        self.e_p_length = e_prompt_length
        self.e_pool_size = e_prompt_pool

        if rng is None:
            rng = jax.random.PRNGKey(0)
        keys = jax.random.split(rng, len(self.g_layers) + 2 * len(self.e_layers))
        ki = 0
        # tensor_prompt(..., ortho=False) -> uniform_(0, 1)
        self.g_p = {}
        for g in self.g_layers:
            self.g_p[g] = jax.random.uniform(keys[ki], (g_prompt_length, emb_d),
                                             jnp.float32)
            ki += 1
        self.e_p, self.e_k = {}, {}
        self._e_knT_pad = {}
        for e in self.e_layers:
            self.e_p[e] = jax.random.uniform(
                keys[ki], (e_prompt_pool, e_prompt_length, emb_d), jnp.float32)
            ki += 1
            self.e_k[e] = jax.random.uniform(
                keys[ki], (e_prompt_pool, key_dim), jnp.float32)
            ki += 1
            # Hoisted: normalize + transpose + pad keys once (parameters only
            # change on optimizer steps, not per forward call).
            self._e_knT_pad[e] = _prep_keys(self.e_k[e])

    def process_task_count(self):
        self.task_count += 1

    def forward(self, x_querry, l, x_block, train=False, task_id=None):
        B = x_querry.shape[0]
        loss = 0
        e_valid = l in self.e_layers
        g_valid = l in self.g_layers

        if e_valid:
            p = self.e_p[l]
            # Pallas hot path: cosine-sim matmul + top-1 index.
            cos_sim, k_top = _e_prompt_topk_padded(
                x_querry, self._e_knT_pad[l], self.e_pool_size)
            i = self.e_p_length // 2
            if train and self.task_id_bootstrap:
                loss = jnp.sum(1.0 - cos_sim[:, task_id])
                P_ = jnp.broadcast_to(p[task_id][None],
                                      (B, self.e_p_length, self.emb_d))
                Ek = P_[:, :i, :].reshape(B, -1, self.emb_d)
                Ev = P_[:, i:, :].reshape(B, -1, self.emb_d)
            else:
                # top_k = 1: prompt row gather done outside the kernel (cheap,
                # exact jnp.take) -- the old in-kernel one-hot matmul over the
                # 128-padded pool was the kernel's critical unit.
                sel = jnp.take(p, k_top, axis=0)              # (B, Lp, emb_d)
                if train:
                    k_idx = k_top[:, None]                    # (B, top_k=1)
                    # NOTE: mirrors the torch advanced-indexing quirk:
                    # cos_sim[:, k_idx] has shape (B, B, 1) before the sum.
                    loss = jnp.sum(1.0 - cos_sim[:, k_idx])
                Ek = sel[:, :i, :].reshape(B, -1, self.emb_d)
                Ev = sel[:, i:, :].reshape(B, -1, self.emb_d)

        if g_valid:
            j = self.g_p_length // 2
            gp = self.g_p[l]
            # pure broadcast (no arithmetic) -> plain JAX glue
            P_ = jnp.broadcast_to(gp[None], (B,) + gp.shape)
            Gk = P_[:, :j, :]
            Gv = P_[:, j:, :]

        if e_valid and g_valid:
            Pk = jnp.concatenate((Ek, Gk), axis=1)
            Pv = jnp.concatenate((Ev, Gv), axis=1)
            p_return = [Pk, Pv]
        elif e_valid:
            p_return = [Ek, Ev]
        elif g_valid:
            p_return = [Gk, Gv]
            loss = 0
        else:
            p_return = None
            loss = 0

        if train:
            return p_return, loss, x_block
        else:
            return p_return, 0, x_block


# ----------------------------------------------------------------------------
if __name__ == "__main__":
    emb_d, key_dim = 32, 32
    n_tasks, e_pool, e_len, g_len = 3, 4, 4, 4
    B, seq = 2, 8

    root = jax.random.PRNGKey(0)
    k_params, k_q, k_x, k_big = jax.random.split(root, 4)

    model = DualPromptPallas(emb_d, n_tasks, e_pool, e_len, g_len,
                             key_dim=key_dim, rng=k_params)

    x_querry = jax.random.normal(k_q, (B, key_dim), jnp.float32)
    x_block = jax.random.normal(k_x, (B, seq, emb_d), jnp.float32)

    # e-layer, eval
    (Ek, Ev), loss_e, xb = model.forward(x_querry, l=2, x_block=x_block, train=False)
    # g-layer, eval
    (Gk, Gv), loss_g, _ = model.forward(x_querry, l=0, x_block=x_block, train=False)
    # e-layer, train with task_id bootstrap
    (Tk, Tv), loss_t, _ = model.forward(x_querry, l=3, x_block=x_block,
                                        train=True, task_id=1)
    # e-layer, train without bootstrap (exercises the argmax / quirky-loss path)
    model.task_id_bootstrap = False
    (Nk, Nv), loss_n, _ = model.forward(x_querry, l=4, x_block=x_block,
                                        train=True, task_id=None)
    model.task_id_bootstrap = True

    jax.block_until_ready((Ek, Ev, Gk, Gv, Tk, Tv, Nk, Nv, loss_t, loss_n, xb))

    # Pure-JAX reference for the cosine-similarity path.
    def ref_cos(xq, K):
        qn = xq / jnp.maximum(jnp.linalg.norm(xq, axis=1, keepdims=True), 1e-12)
        Kn = K / jnp.maximum(jnp.linalg.norm(K, axis=1, keepdims=True), 1e-12)
        return qn @ Kn.T

    # Single-tile path.
    cos_k, sel_k = e_prompt_select(x_querry, model.e_k[2], model.e_p[2])
    cos_ref = ref_cos(x_querry, model.e_k[2])
    assert cos_k.shape == (B, e_pool)
    # bf16 MXU operands with f32 accumulation -> small deviation from f32 ref.
    assert jnp.allclose(cos_k, cos_ref, atol=2e-2), "cos_sim mismatch"
    idx = jnp.argmax(cos_k, axis=1)
    assert jnp.allclose(sel_k, model.e_p[2][idx], atol=1e-6), "prompt gather mismatch"
    # Kernel's first-occurrence top-1 index matches argmax of its own cos.
    cos_i, idx_i = e_prompt_topk(x_querry, model.e_k[2])
    assert bool(jnp.all(idx_i == jnp.argmax(cos_i, axis=1))), "idx mismatch"

    # Multi-tile path (grid > 1, batch padding): B=40 with tile size 16.
    Bb = 40
    xq_big = jax.random.normal(k_big, (Bb, key_dim), jnp.float32)
    cos_b, sel_b = e_prompt_select(xq_big, model.e_k[3], model.e_p[3], tb=16)
    cos_ref_b = ref_cos(xq_big, model.e_k[3])
    assert cos_b.shape == (Bb, e_pool)
    assert jnp.allclose(cos_b, cos_ref_b, atol=2e-2), "cos_sim mismatch (tiled)"
    idx_b = jnp.argmax(cos_b, axis=1)
    assert jnp.allclose(sel_b, model.e_p[3][idx_b], atol=1e-6), \
        "prompt gather mismatch (tiled)"

    # Shape checks matching the torch forward semantics (top_k = 1).
    assert Ek.shape == (B, e_len // 2, emb_d) and Ev.shape == (B, e_len // 2, emb_d)
    assert Gk.shape == (B, g_len // 2, emb_d) and Gv.shape == (B, g_len // 2, emb_d)
    assert Tk.shape == (B, e_len // 2, emb_d) and Tv.shape == (B, e_len // 2, emb_d)
    assert Nk.shape == (B, e_len // 2, emb_d) and Nv.shape == (B, e_len // 2, emb_d)
    assert xb.shape == x_block.shape

    print("KERNEL_OK")
</pallas_src>

<mosaic_0001>
module attributes {stable_mosaic.version = 11 : i64} {
  func.func @_e_prompt_kernel(%arg0: i32, %arg1: memref<8x32xf32, #tpu.memory_space<vmem>>, %arg2: memref<32x128xbf16, #tpu.memory_space<vmem>>, %arg3: memref<8x128xf32, #tpu.memory_space<vmem>>, %arg4: memref<8x1xi32, #tpu.memory_space<vmem>>) attributes {dimension_semantics = [#tpu.dimension_semantics<parallel>], iteration_bounds = array<i64: 1>, scalar_prefetch = 0 : i64, scratch_operands = 0 : i64, tpu.core_type = #tpu.core_type<tc>, window_params = [{transform_indices = @transform_0, window_bounds = array<i64: 8, 32>}, {pipeline_mode = #tpu.pipeline_mode<synchronous>, transform_indices = @transform_1, window_bounds = array<i64: 32, 128>}, {transform_indices = @transform_2, window_bounds = array<i64: 8, 128>}, {transform_indices = @transform_3, window_bounds = array<i64: 8, 1>}]} {
    %c0 = arith.constant 0 : index
    %c0_0 = arith.constant 0 : index
    %0 = vector.load %arg1[%c0, %c0_0] : memref<8x32xf32, #tpu.memory_space<vmem>>, vector<8x32xf32>
    %1 = arith.mulf %0, %0 : vector<8x32xf32>
    %cst = arith.constant dense<0.000000e+00> : vector<8xf32>
    %2 = vector.multi_reduction <add>, %1, %cst [1] : vector<8x32xf32> to vector<8xf32>
    %3 = vector.shape_cast %2 : vector<8xf32> to vector<8x1xf32>
    %4 = arith.truncf %0 : vector<8x32xf32> to vector<8x32xbf16>
    %c0_1 = arith.constant 0 : index
    %c0_2 = arith.constant 0 : index
    %5 = vector.load %arg2[%c0_1, %c0_2] : memref<32x128xbf16, #tpu.memory_space<vmem>>, vector<32x128xbf16>
    %cst_3 = arith.constant dense<0.000000e+00> : vector<8x128xf32>
    %6 = tpu.matmul %4, %5, %cst_3 {dimension_numbers = #tpu.dot_dimension_numbers<[1], [0], [0], [1], [0, 0, 1, 1], [], []>} : vector<8x32xbf16>, vector<32x128xbf16>, vector<8x128xf32> -> vector<8x128xf32>
    %cst_4 = arith.constant 1.000000e-24 : f32
    %7 = vector.broadcast %cst_4 : f32 to vector<8x1xf32>
    %8 = arith.maximumf %3, %7 : vector<8x1xf32>
    %9 = math.rsqrt %8 : vector<8x1xf32>
    %10 = vector.broadcast %9 : vector<8x1xf32> to vector<8x128xf32>
    %11 = arith.mulf %6, %10 : vector<8x128xf32>
    %c0_5 = arith.constant 0 : index
    %c0_6 = arith.constant 0 : index
    %12 = vector.load %arg3[%c0_5, %c0_6] : memref<8x128xf32, #tpu.memory_space<vmem>>, vector<8x128xf32>
    tpu.vector_store %arg3[%c0_5, %c0_6], %11 {strides = array<i32>} : memref<8x128xf32, #tpu.memory_space<vmem>>, vector<8x128xf32>,
    %13 = tpu.iota {dimensions = array<i32: 1>} : vector<8x128xi32>
    %c4_i32 = arith.constant 4 : i32
    %14 = vector.broadcast %c4_i32 : i32 to vector<8x128xi32>
    %15 = arith.cmpi slt, %13, %14 : vector<8x128xi32>
    %cst_7 = arith.constant 0xFF800000 : f32
    %16 = vector.broadcast %cst_7 : f32 to vector<8x128xf32>
    %17 = arith.select %15, %11, %16 : vector<8x128xi1>, vector<8x128xf32>
    %cst_8 = arith.constant dense<0xFF800000> : vector<8xf32>
    %18 = vector.multi_reduction <maximumf>, %17, %cst_8 [1] : vector<8x128xf32> to vector<8xf32>
    %19 = vector.shape_cast %18 : vector<8xf32> to vector<8x1xf32>
    %20 = vector.broadcast %19 : vector<8x1xf32> to vector<8x128xf32>
    %21 = arith.cmpf oeq, %17, %20 : vector<8x128xf32>
    %c128_i32 = arith.constant 128 : i32
    %22 = vector.broadcast %c128_i32 : i32 to vector<8x128xi32>
    %23 = arith.select %21, %13, %22 : vector<8x128xi1>, vector<8x128xi32>
    %cst_9 = arith.constant dense<2147483647> : vector<8xi32>
    %24 = vector.multi_reduction <minsi>, %23, %cst_9 [1] : vector<8x128xi32> to vector<8xi32>
    %25 = vector.shape_cast %24 : vector<8xi32> to vector<8x1xi32>
    %c0_10 = arith.constant 0 : index
    %c0_11 = arith.constant 0 : index
    %26 = vector.load %arg4[%c0_10, %c0_11] : memref<8x1xi32, #tpu.memory_space<vmem>>, vector<8x1xi32>
    tpu.vector_store %arg4[%c0_10, %c0_11], %25 {strides = array<i32>} : memref<8x1xi32, #tpu.memory_space<vmem>>, vector<8x1xi32>,
    return
  }
  func.func @transform_0(%arg0: i32) -> (i32, i32) {
    %c0_i32 = arith.constant 0 : i32
    %c0_i32_0 = arith.constant 0 : i32
    return %arg0, %c0_i32 : i32, i32
  }
  func.func @transform_1(%arg0: i32) -> (i32, i32) {
    %c0_i32 = arith.constant 0 : i32
    %c0_i32_0 = arith.constant 0 : i32
    %c0_i32_1 = arith.constant 0 : i32
    return %c0_i32, %c0_i32_0 : i32, i32
  }
  func.func @transform_2(%arg0: i32) -> (i32, i32) {
    %c0_i32 = arith.constant 0 : i32
    %c0_i32_0 = arith.constant 0 : i32
    return %arg0, %c0_i32 : i32, i32
  }
  func.func @transform_3(%arg0: i32) -> (i32, i32) {
    %c0_i32 = arith.constant 0 : i32
    %c0_i32_0 = arith.constant 0 : i32
    return %arg0, %c0_i32 : i32, i32
  }
}

</mosaic_0001>

<bundles_post_ra>
// kernel: tpu_custom_call.1
= control target key start
LH: loop header
LB: loop body
LE: loop exit
PB: predicated region body
PF: predicated region fallthrough
CT: control target
= control target key end

     0   :  { %9 = vsyncpa [#allocation3], 0  ;;  %s276_s0 = inlined_call_operand.hbm [shape: f32[8,32], index: 0, kind: input, shape index: {}]   ;;  %s277_s1 = inlined_call_operand.hbm [shape: bf16[32,128], index: 1, kind: input, shape index: {}]   ;;  %s278_s2 = inlined_call_operand.hbm [shape: f32[8,128], index: 2, kind: output, shape index: {0}]   ;;  %s279_s3 = inlined_call_operand.vmem [shape: s32[8,1], index: 3, kind: output, shape index: {1}]  }
   0x1   :  { %10 = vsyncpa [#allocation6], 0 }
   0x2   :  { %11 = vsyncpa [#allocation4], 0  ;;  %s17_s14 = sshll.u32 %s276_s0, 4  ;;  %s239_s15 = smov [#allocation2]   ;;  %s18_s14 = int_to_ptr.hbm [resolvable:$true] %s17_s14 }
   0x3   :  { %s19_s16 = sshll.u32 %s239_s15, 4  ;;  %s27_s19 = sshll.u32 %s277_s1, 4  ;;  %s20_s16 = int_to_ptr.vmem [resolvable:$true] %s19_s16  ;;  %s28_s19 = int_to_ptr.hbm [resolvable:$true] %s27_s19 }
   0x4   :  { %22 = dma.hbm_to_vmem [thread:$0]  %s18_s14, 128, %s20_s16, [#allocation3]  }
   0x5   :  { %s240_s20 = smov [#allocation5]   ;;  %s241_s22 = smov 64  }
   0x6   :  { %s29_s21 = sshll.u32 %s240_s20, 4  ;;  %s242_s23 = smov 4   ;;  %s30_s21 = int_to_ptr.vmem [resolvable:$true] %s29_s21 }
   0x7   :  { %35 = dma.hbm_to_vmem [thread:$0]  %s28_s19, 256, %s30_s21, [#allocation6], %s241_s22, %s241_s22, %s242_s23  }
   0x8   :  { %233 = dma.done.wait [#allocation3], 128  }
   0x9   :  { %234 = vsyncadd [#allocation3], 4294967168 }
   0xa   :  { %235 = dma.done.wait [#allocation6], 256  }
   0xb   :  { %236 = vsyncadd [#allocation6], 4294967040  ;;  %v153_v0 = vld [vmem:[#allocation5 + $0x8] sm:$0xff]  ;;  %v45_v1 = vld [vmem:[#allocation2] sm:$0xff]  ;;  %vm47_vm0 = vcmask 261120   ;;  %v97_v11 = vlaneseq  ;;  %s243_s0 = smov [#allocation7]  }
   0xc   :  { %v46_v2 = vmul.f32 %v45_v1, %v45_v1  ;;  %77 = vmatpush.bf16.msra.mxu0 %v153_v0  ;;  %v152_v3 = vld [vmem:[#allocation5] sm:$0xff]  ;;  %v51_v5 = vpack.c.bf16 %v45_v1, %v45_v1  ;;  %s126_s1 = sshll.u32 %s243_s0, 4  ;;  %s128_s26 = sshll.u32 %s278_s2, 4  ;;  %vm119_vm7 = vcmask 7168   ;;  %s127_s1 = int_to_ptr.vmem [resolvable:$true] %s126_s1  ;;  %s129_s26 = int_to_ptr.hbm [resolvable:$true] %s128_s26 }
   0xd   :  { %v98_v15 = vand.u32 127, %v97_v11 }
   0xe   :  { %v48_v4 = vsel %vm47_vm0, %v46_v2, 0.0 }
   0xf   :  { %49 = vadd.xlane.f32.xlu0 %v48_v4  ;;  %vm99_vm4 = vcmp.lt.s32.totalorder %v98_v15, 4 }
  0x10   :  { %78 = vmatpush.bf16.msra.mxu0 %v152_v3 }
  0x13   :  { %151 = vmatmul.msk.bf16.vlgmr.msra.gmra.mxu0 %vm47_vm0, %v51_v5 }
  0x82   :  { %v50_v6 = vpop.xlane.xlu0 %49 }
  0x83   :  { %v84_v7 = vmax.f32 %v50_v6, 1e-24 }
  0x85   :  { %159 = vrsqrt.f32 %v84_v7  ;;  %vm91_vm2 = vweird.f32 %v84_v7 }
  0x8b   :  { %v160_v8 = vpop.eup %159 }
  0x8c   :  { %v86_v9 = vmul.f32 %v160_v8, %v84_v7  ;;  %vm92_vm1 = vweird.f32 %v160_v8 }
  0x8d   :  { %vm93_vm3 = vmor %vm91_vm2, %vm92_vm1 }
  0x8e   :  { %v87_v10 = vmul.f32 %v160_v8, %v86_v9 }
  0x90   :  { %v88_v12 = vmul.f32 0.5, %v87_v10  ;;  %v80_v13 = vpop.f32.mrf.mxu0 }
  0x92   :  { %v89_v14 = vsub.f32 1.5, %v88_v12 }
  0x94   :  { %v90_v16 = vmul.f32 %v160_v8, %v89_v14 }
  0x96   :  { %v94_v17 = vsel %vm93_vm3, %v160_v8, %v90_v16 }
  0x97   :  { %v95_v18 = vmul.f32 %v94_v17, %v80_v13 }
  0x98   :  { %v82_v19 = vpop.f32.mrf.mxu0 }
  0x99   :  { %96 = vst [vmem:[#allocation7] sm:$0xff] %v95_v18  ;;  %v100_v20 = vsel %vm99_vm4, %v95_v18, -inf }
  0x9a   :  { %101 = vmax.xlane.f32.xlu0 %v100_v20  ;;  %131 = dma.vmem_to_hbm [thread:$0]  %s127_s1, 128, %s129_s26, [#allocation4]  }
 0x10d   :  { %v102_v21 = vpop.xlane.xlu0 %101 }
 0x10e   :  { %vm103_vm5 = vcmp.eq.f32.partialorder %v100_v20, %v102_v21 }
 0x10f   :  { %v104_v22 = vsel %vm103_vm5, %v98_v15, 128 }
 0x110   :  { %v106_v23 = vshra.s32 %v104_v22, 16  ;;  %v105_v25 = vand.u32 65535, %v104_v22 }
 0x112   :  { %v108_v24 = vcvt.s32.f32 %v106_v23  ;;  %v107_v27 = vcvt.s32.f32 %v105_v25 }
 0x114   :  { %109 = vmin.xlane.f32.xlu1 %v108_v24 }
 0x187   :  { %v110_v26 = vpop.xlane.xlu1 %109 }
 0x188   :  { %vm111_vm6 = vcmp.eq.f32.partialorder %v108_v24, %v110_v26  ;;  %v116_v29 = vcvt.f32.s32 %v110_v26 }
 0x189   :  { %v112_v28 = vsel %vm111_vm6, %v107_v27, inf }
 0x18a   :  { %113 = vmin.xlane.f32.xlu1 %v112_v28  ;;  %v117_v31 = vshll.u32 %v116_v29, 16 }
 0x1fd   :  { %v114_v30 = vpop.xlane.xlu1 %113 }
 0x1fe   :  { %v115_v32 = vcvt.f32.s32 %v114_v30 }
 0x200   :  { %v118_v33 = vadd.s32 %v117_v31, %v115_v32 }
 0x202   :  { %120 = vst.msk [vmem:[%s279_s3] sm:$0xff] %vm119_vm7, %v118_v33 }
 0x203   :  { %237 = dma.done.wait [#allocation4], 128  }
 0x204   :  { %238 = vsyncadd [#allocation4], 4294967168 }
 0x205   :  { %140 = vsyncpa [#allocation3], 1 }
 0x206   :  { %141 = vsyncpa [#allocation6], 1 }
 0x207   :  { %142 = vsyncpa [#allocation4], 1 }

</bundles_post_ra>
